<compile_context>
chip_gen: v5e
topology: v5e:2x2
jax: 0.10.0
libtpu: 0.0.40
codegen_flags: <defaults>
</compile_context>

<pallas_src>
import jax
import jax.numpy as jnp
from jax.experimental import pallas as pl
from jax.experimental.pallas import tpu as pltpu

DEFAULT_TB = 2048        # max batch tile (sweep 1024-4096)
_VPU_L1_MAX_K = 16       # layer 1 is done on the VPU when in_dim <= this


def _round_up(n, m):
    return (n + m - 1) // m * m


def _make_kernel(in_dim, use_vpu_l1):
    """Fused 5-layer MLP forward on one (TB, in_dim) batch tile."""

    def kernel(x_ref,
               w1_ref, b1_ref, w2_ref, b2_ref, w3_ref, b3_ref,
               w4_ref, b4_ref, w5_ref, b5_ref, o_ref):

        def mxu_layer(h_bf16, w_ref, b_ref, out_dtype=jnp.bfloat16):
            # bf16 x bf16 MXU matmul, f32 accumulate, f32 bias + ReLU,
            # cast once for the next layer (bf16 activations carried).
            y = jnp.dot(h_bf16, w_ref[...],
                        preferred_element_type=jnp.float32) + b_ref[...]
            return jnp.maximum(y, 0.0).astype(out_dtype)

        x = x_ref[...]                                    # (TB, in_dim) f32
        if use_vpu_l1:
            # Layer 1 (tiny K) off the MXU: unrolled VPU broadcast-FMAs in f32.
            w1 = w1_ref[...]                              # (in_dim, 64) f32
            acc = x[:, 0:1] * w1[0:1, :]
            for k in range(1, in_dim):
                acc = acc + x[:, k:k + 1] * w1[k:k + 1, :]
            h = jnp.maximum(acc + b1_ref[...], 0.0).astype(jnp.bfloat16)
        else:
            h = mxu_layer(x.astype(jnp.bfloat16), w1_ref, b1_ref)

        h = mxu_layer(h, w2_ref, b2_ref)                  # (TB, 128) bf16
        h = mxu_layer(h, w3_ref, b3_ref)                  # (TB, 256) bf16
        h = mxu_layer(h, w4_ref, b4_ref)                  # (TB, 256) bf16
        # Final layer: ReLU(output) in f32, stored unpadded (TB, 4).
        o_ref[...] = mxu_layer(h, w5_ref, b5_ref, out_dtype=jnp.float32)

    return kernel


def init_params(key, input_dim=5, hidden=64):
    """nn.Linear-style init: uniform(-1/sqrt(fan_in), 1/sqrt(fan_in)).

    Weights stored as (in, out) == transpose of PyTorch's (out, in); bias as (1, out).
    """
    dims = [input_dim, hidden, hidden * 2, hidden * 4, hidden * 4, 4]
    params = []
    for i in range(5):
        fan_in, fan_out = dims[i], dims[i + 1]
        key, kw, kb = jax.random.split(key, 3)
        bound = 1.0 / jnp.sqrt(jnp.float32(fan_in))
        w = jax.random.uniform(kw, (fan_in, fan_out), jnp.float32, -bound, bound)
        b = jax.random.uniform(kb, (1, fan_out), jnp.float32, -bound, bound)
        params.append((w, b))
    return params


def ann_forward(x, params, *, tb_max=DEFAULT_TB):
    batch, in_dim = x.shape
    out_dim = params[-1][0].shape[1]          # 4
    use_vpu_l1 = in_dim <= _VPU_L1_MAX_K

    # ---- batch tiling --------------------------------------------------------
    # Round batch to the sublane multiple (8), then split into grid steps:
    #   * at least enough steps that the tile stays <= tb_max,
    #   * at least 2 steps when there is enough work, so ("parallel",) can shard
    #     the batch across both TensorCores on v7x.
    # Padding waste is at most `steps * 8` rows (not a full tile).
    b8 = _round_up(batch, 8)
    steps = max(pl.cdiv(b8, tb_max), 2 if b8 >= 256 else 1)
    tb = _round_up(pl.cdiv(b8, steps), 8)
    padded_batch = steps * tb
    x_p = x if padded_batch == batch else jnp.pad(x, ((0, padded_batch - batch), (0, 0)))

    # ---- parameters: bf16 weights (f32 for the VPU layer-1), f32 biases -------
    flat = []
    for i, (w, b) in enumerate(params):
        w_dtype = jnp.float32 if (i == 0 and use_vpu_l1) else jnp.bfloat16
        flat.extend([w.astype(w_dtype), b.astype(jnp.float32)])

    grid = (steps,)
    x_spec = pl.BlockSpec((tb, in_dim), lambda i: (i, 0))
    out_spec = pl.BlockSpec((tb, out_dim), lambda i: (i, 0))
    # Weights/biases: full-array blocks, constant index_map -> VMEM-resident,
    # no re-fetch across grid steps.
    param_specs = [pl.BlockSpec(a.shape, lambda i: (0, 0)) for a in flat]

    dims = [in_dim] + [w.shape[1] for w, _ in params]
    flops = 2 * padded_batch * sum(dims[i] * dims[i + 1] for i in range(len(dims) - 1))
    bytes_accessed = (int(x_p.size) * 4
                      + padded_batch * out_dim * 4
                      + sum(int(a.size) * a.dtype.itemsize for a in flat))

    # Rough per-step VMEM footprint: x/out blocks are tile-padded to 128 lanes and
    # double-buffered, weights double-buffered, plus activation staging.
    est = (2 * 2 * tb * 128 * 4
           + 2 * sum(int(a.size) * a.dtype.itemsize for a in flat)
           + 6 * tb * 256 * 4)
    vmem_limit = int(min(48 * 1024 * 1024, max(32 * 1024 * 1024, est)))

    out = pl.pallas_call(
        _make_kernel(in_dim, use_vpu_l1),
        out_shape=jax.ShapeDtypeStruct((padded_batch, out_dim), jnp.float32),
        grid=grid,
        in_specs=[x_spec] + param_specs,
        out_specs=out_spec,
        compiler_params=pltpu.CompilerParams(
            dimension_semantics=("parallel",),
            vmem_limit_bytes=vmem_limit),
        cost_estimate=pl.CostEstimate(flops=flops, transcendentals=0,
                                      bytes_accessed=bytes_accessed),
    )(x_p, *flat)

    return out if padded_batch == batch else out[:batch]


def ann_reference(x, params):
    """Pure-JAX reference mirroring the kernel's math (f32 layer 1, bf16 MXU rest)."""
    use_vpu_l1 = x.shape[1] <= _VPU_L1_MAX_K
    h = x
    for i, (w, b) in enumerate(params):
        if i == 0 and use_vpu_l1:
            y = jnp.dot(h, w.astype(jnp.float32),
                        precision=jax.lax.Precision.HIGHEST) + b.astype(jnp.float32)
        else:
            y = jnp.dot(h.astype(jnp.bfloat16), w.astype(jnp.bfloat16),
                        preferred_element_type=jnp.float32) + b.astype(jnp.float32)
        h = jnp.maximum(y, 0.0)
    return h


if __name__ == "__main__":
    key = jax.random.PRNGKey(0)
    key, kx, kx2 = jax.random.split(key, 3)

    batch, input_dim, hidden = 8, 5, 64
    params = init_params(key, input_dim=input_dim, hidden=hidden)

    # Small demo batch (single grid step).
    x = jax.random.normal(kx, (batch, input_dim), jnp.float32)
    out = jax.block_until_ready(ann_forward(x, params))
    ref = ann_reference(x, params)
    assert out.shape == (batch, 4), out.shape
    assert jnp.allclose(out, ref, atol=2e-3, rtol=2e-3), "mismatch vs reference (small)"

    # Awkward batch size: exercises multi-step grid + row padding/slice path.
    batch2 = 600
    x2 = jax.random.normal(kx2, (batch2, input_dim), jnp.float32)
    out2 = jax.block_until_ready(ann_forward(x2, params))
    ref2 = ann_reference(x2, params)
    assert out2.shape == (batch2, 4), out2.shape
    assert jnp.allclose(out2, ref2, atol=2e-3, rtol=2e-3), "mismatch vs reference (tiled)"

    print("KERNEL_OK")
</pallas_src>

<mosaic_0001>
module attributes {stable_mosaic.version = 11 : i64} {
  func.func @kernel(%arg0: i32, %arg1: memref<8x5xf32, #tpu.memory_space<vmem>>, %arg2: memref<5x64xf32, #tpu.memory_space<vmem>>, %arg3: memref<1x64xf32, #tpu.memory_space<vmem>>, %arg4: memref<64x128xbf16, #tpu.memory_space<vmem>>, %arg5: memref<1x128xf32, #tpu.memory_space<vmem>>, %arg6: memref<128x256xbf16, #tpu.memory_space<vmem>>, %arg7: memref<1x256xf32, #tpu.memory_space<vmem>>, %arg8: memref<256x256xbf16, #tpu.memory_space<vmem>>, %arg9: memref<1x256xf32, #tpu.memory_space<vmem>>, %arg10: memref<256x4xbf16, #tpu.memory_space<vmem>>, %arg11: memref<1x4xf32, #tpu.memory_space<vmem>>, %arg12: memref<8x4xf32, #tpu.memory_space<vmem>>) attributes {dimension_semantics = [#tpu.dimension_semantics<parallel>], iteration_bounds = array<i64: 1>, scalar_prefetch = 0 : i64, scratch_operands = 0 : i64, tpu.core_type = #tpu.core_type<tc>, window_params = [{transform_indices = @transform_0, window_bounds = array<i64: 8, 5>}, {pipeline_mode = #tpu.pipeline_mode<synchronous>, transform_indices = @transform_1, window_bounds = array<i64: 5, 64>}, {pipeline_mode = #tpu.pipeline_mode<synchronous>, transform_indices = @transform_2, window_bounds = array<i64: 1, 64>}, {pipeline_mode = #tpu.pipeline_mode<synchronous>, transform_indices = @transform_3, window_bounds = array<i64: 64, 128>}, {pipeline_mode = #tpu.pipeline_mode<synchronous>, transform_indices = @transform_4, window_bounds = array<i64: 1, 128>}, {pipeline_mode = #tpu.pipeline_mode<synchronous>, transform_indices = @transform_5, window_bounds = array<i64: 128, 256>}, {pipeline_mode = #tpu.pipeline_mode<synchronous>, transform_indices = @transform_6, window_bounds = array<i64: 1, 256>}, {pipeline_mode = #tpu.pipeline_mode<synchronous>, transform_indices = @transform_7, window_bounds = array<i64: 256, 256>}, {pipeline_mode = #tpu.pipeline_mode<synchronous>, transform_indices = @transform_8, window_bounds = array<i64: 1, 256>}, {pipeline_mode = #tpu.pipeline_mode<synchronous>, transform_indices = @transform_9, window_bounds = array<i64: 256, 4>}, {pipeline_mode = #tpu.pipeline_mode<synchronous>, transform_indices = @transform_10, window_bounds = array<i64: 1, 4>}, {transform_indices = @transform_11, window_bounds = array<i64: 8, 4>}]} {
    %c0 = arith.constant 0 : index
    %c0_0 = arith.constant 0 : index
    %0 = vector.load %arg1[%c0, %c0_0] : memref<8x5xf32, #tpu.memory_space<vmem>>, vector<8x5xf32>
    %c0_1 = arith.constant 0 : index
    %c0_2 = arith.constant 0 : index
    %1 = vector.load %arg2[%c0_1, %c0_2] : memref<5x64xf32, #tpu.memory_space<vmem>>, vector<5x64xf32>
    %2 = vector.extract_strided_slice %0 {offsets = [0, 0], sizes = [8, 1], strides = [1, 1]} : vector<8x5xf32> to vector<8x1xf32>
    %3 = vector.extract_strided_slice %1 {offsets = [0, 0], sizes = [1, 64], strides = [1, 1]} : vector<5x64xf32> to vector<1x64xf32>
    %4 = vector.broadcast %2 : vector<8x1xf32> to vector<8x64xf32>
    %5 = vector.broadcast %3 : vector<1x64xf32> to vector<8x64xf32>
    %6 = arith.mulf %4, %5 : vector<8x64xf32>
    %7 = vector.extract_strided_slice %0 {offsets = [0, 1], sizes = [8, 1], strides = [1, 1]} : vector<8x5xf32> to vector<8x1xf32>
    %8 = vector.extract_strided_slice %1 {offsets = [1, 0], sizes = [1, 64], strides = [1, 1]} : vector<5x64xf32> to vector<1x64xf32>
    %9 = vector.broadcast %7 : vector<8x1xf32> to vector<8x64xf32>
    %10 = vector.broadcast %8 : vector<1x64xf32> to vector<8x64xf32>
    %11 = arith.mulf %9, %10 : vector<8x64xf32>
    %12 = arith.addf %6, %11 : vector<8x64xf32>
    %13 = vector.extract_strided_slice %0 {offsets = [0, 2], sizes = [8, 1], strides = [1, 1]} : vector<8x5xf32> to vector<8x1xf32>
    %14 = vector.extract_strided_slice %1 {offsets = [2, 0], sizes = [1, 64], strides = [1, 1]} : vector<5x64xf32> to vector<1x64xf32>
    %15 = vector.broadcast %13 : vector<8x1xf32> to vector<8x64xf32>
    %16 = vector.broadcast %14 : vector<1x64xf32> to vector<8x64xf32>
    %17 = arith.mulf %15, %16 : vector<8x64xf32>
    %18 = arith.addf %12, %17 : vector<8x64xf32>
    %19 = vector.extract_strided_slice %0 {offsets = [0, 3], sizes = [8, 1], strides = [1, 1]} : vector<8x5xf32> to vector<8x1xf32>
    %20 = vector.extract_strided_slice %1 {offsets = [3, 0], sizes = [1, 64], strides = [1, 1]} : vector<5x64xf32> to vector<1x64xf32>
    %21 = vector.broadcast %19 : vector<8x1xf32> to vector<8x64xf32>
    %22 = vector.broadcast %20 : vector<1x64xf32> to vector<8x64xf32>
    %23 = arith.mulf %21, %22 : vector<8x64xf32>
    %24 = arith.addf %18, %23 : vector<8x64xf32>
    %25 = vector.extract_strided_slice %0 {offsets = [0, 4], sizes = [8, 1], strides = [1, 1]} : vector<8x5xf32> to vector<8x1xf32>
    %26 = vector.extract_strided_slice %1 {offsets = [4, 0], sizes = [1, 64], strides = [1, 1]} : vector<5x64xf32> to vector<1x64xf32>
    %27 = vector.broadcast %25 : vector<8x1xf32> to vector<8x64xf32>
    %28 = vector.broadcast %26 : vector<1x64xf32> to vector<8x64xf32>
    %29 = arith.mulf %27, %28 : vector<8x64xf32>
    %30 = arith.addf %24, %29 : vector<8x64xf32>
    %c0_3 = arith.constant 0 : index
    %c0_4 = arith.constant 0 : index
    %31 = vector.load %arg3[%c0_3, %c0_4] : memref<1x64xf32, #tpu.memory_space<vmem>>, vector<1x64xf32>
    %32 = vector.broadcast %31 : vector<1x64xf32> to vector<8x64xf32>
    %33 = arith.addf %30, %32 : vector<8x64xf32>
    %cst = arith.constant 0.000000e+00 : f32
    %34 = vector.broadcast %cst : f32 to vector<8x64xf32>
    %35 = arith.maximumf %33, %34 : vector<8x64xf32>
    %36 = arith.truncf %35 : vector<8x64xf32> to vector<8x64xbf16>
    %c0_5 = arith.constant 0 : index
    %c0_6 = arith.constant 0 : index
    %37 = vector.load %arg4[%c0_5, %c0_6] : memref<64x128xbf16, #tpu.memory_space<vmem>>, vector<64x128xbf16>
    %cst_7 = arith.constant dense<0.000000e+00> : vector<8x128xf32>
    %38 = tpu.matmul %36, %37, %cst_7 {dimension_numbers = #tpu.dot_dimension_numbers<[1], [0], [0], [1], [0, 0, 1, 1], [], []>} : vector<8x64xbf16>, vector<64x128xbf16>, vector<8x128xf32> -> vector<8x128xf32>
    %c0_8 = arith.constant 0 : index
    %c0_9 = arith.constant 0 : index
    %39 = vector.load %arg5[%c0_8, %c0_9] : memref<1x128xf32, #tpu.memory_space<vmem>>, vector<1x128xf32>
    %40 = vector.broadcast %39 : vector<1x128xf32> to vector<8x128xf32>
    %41 = arith.addf %38, %40 : vector<8x128xf32>
    %cst_10 = arith.constant 0.000000e+00 : f32
    %42 = vector.broadcast %cst_10 : f32 to vector<8x128xf32>
    %43 = arith.maximumf %41, %42 : vector<8x128xf32>
    %44 = arith.truncf %43 : vector<8x128xf32> to vector<8x128xbf16>
    %c0_11 = arith.constant 0 : index
    %c0_12 = arith.constant 0 : index
    %45 = vector.load %arg6[%c0_11, %c0_12] : memref<128x256xbf16, #tpu.memory_space<vmem>>, vector<128x256xbf16>
    %cst_13 = arith.constant dense<0.000000e+00> : vector<8x256xf32>
    %46 = tpu.matmul %44, %45, %cst_13 {dimension_numbers = #tpu.dot_dimension_numbers<[1], [0], [0], [1], [0, 0, 1, 1], [], []>} : vector<8x128xbf16>, vector<128x256xbf16>, vector<8x256xf32> -> vector<8x256xf32>
    %c0_14 = arith.constant 0 : index
    %c0_15 = arith.constant 0 : index
    %47 = vector.load %arg7[%c0_14, %c0_15] : memref<1x256xf32, #tpu.memory_space<vmem>>, vector<1x256xf32>
    %48 = vector.broadcast %47 : vector<1x256xf32> to vector<8x256xf32>
    %49 = arith.addf %46, %48 : vector<8x256xf32>
    %cst_16 = arith.constant 0.000000e+00 : f32
    %50 = vector.broadcast %cst_16 : f32 to vector<8x256xf32>
    %51 = arith.maximumf %49, %50 : vector<8x256xf32>
    %52 = arith.truncf %51 : vector<8x256xf32> to vector<8x256xbf16>
    %c0_17 = arith.constant 0 : index
    %c0_18 = arith.constant 0 : index
    %53 = vector.load %arg8[%c0_17, %c0_18] : memref<256x256xbf16, #tpu.memory_space<vmem>>, vector<256x256xbf16>
    %cst_19 = arith.constant dense<0.000000e+00> : vector<8x256xf32>
    %54 = tpu.matmul %52, %53, %cst_19 {dimension_numbers = #tpu.dot_dimension_numbers<[1], [0], [0], [1], [0, 0, 1, 1], [], []>} : vector<8x256xbf16>, vector<256x256xbf16>, vector<8x256xf32> -> vector<8x256xf32>
    %c0_20 = arith.constant 0 : index
    %c0_21 = arith.constant 0 : index
    %55 = vector.load %arg9[%c0_20, %c0_21] : memref<1x256xf32, #tpu.memory_space<vmem>>, vector<1x256xf32>
    %56 = vector.broadcast %55 : vector<1x256xf32> to vector<8x256xf32>
    %57 = arith.addf %54, %56 : vector<8x256xf32>
    %cst_22 = arith.constant 0.000000e+00 : f32
    %58 = vector.broadcast %cst_22 : f32 to vector<8x256xf32>
    %59 = arith.maximumf %57, %58 : vector<8x256xf32>
    %60 = arith.truncf %59 : vector<8x256xf32> to vector<8x256xbf16>
    %c0_23 = arith.constant 0 : index
    %c0_24 = arith.constant 0 : index
    %61 = vector.load %arg10[%c0_23, %c0_24] : memref<256x4xbf16, #tpu.memory_space<vmem>>, vector<256x4xbf16>
    %cst_25 = arith.constant dense<0.000000e+00> : vector<8x4xf32>
    %62 = tpu.matmul %60, %61, %cst_25 {dimension_numbers = #tpu.dot_dimension_numbers<[1], [0], [0], [1], [0, 0, 1, 1], [], []>} : vector<8x256xbf16>, vector<256x4xbf16>, vector<8x4xf32> -> vector<8x4xf32>
    %c0_26 = arith.constant 0 : index
    %c0_27 = arith.constant 0 : index
    %63 = vector.load %arg11[%c0_26, %c0_27] : memref<1x4xf32, #tpu.memory_space<vmem>>, vector<1x4xf32>
    %64 = vector.broadcast %63 : vector<1x4xf32> to vector<8x4xf32>
    %65 = arith.addf %62, %64 : vector<8x4xf32>
    %cst_28 = arith.constant 0.000000e+00 : f32
    %66 = vector.broadcast %cst_28 : f32 to vector<8x4xf32>
    %67 = arith.maximumf %65, %66 : vector<8x4xf32>
    %c0_29 = arith.constant 0 : index
    %c0_30 = arith.constant 0 : index
    %68 = vector.load %arg12[%c0_29, %c0_30] : memref<8x4xf32, #tpu.memory_space<vmem>>, vector<8x4xf32>
    tpu.vector_store %arg12[%c0_29, %c0_30], %67 {strides = array<i32>} : memref<8x4xf32, #tpu.memory_space<vmem>>, vector<8x4xf32>,
    return
  }
  func.func @transform_0(%arg0: i32) -> (i32, i32) {
    %c0_i32 = arith.constant 0 : i32
    %c0_i32_0 = arith.constant 0 : i32
    return %arg0, %c0_i32 : i32, i32
  }
  func.func @transform_1(%arg0: i32) -> (i32, i32) {
    %c0_i32 = arith.constant 0 : i32
    %c0_i32_0 = arith.constant 0 : i32
    %c0_i32_1 = arith.constant 0 : i32
    return %c0_i32, %c0_i32_0 : i32, i32
  }
  func.func @transform_2(%arg0: i32) -> (i32, i32) {
    %c0_i32 = arith.constant 0 : i32
    %c0_i32_0 = arith.constant 0 : i32
    %c0_i32_1 = arith.constant 0 : i32
    return %c0_i32, %c0_i32_0 : i32, i32
  }
  func.func @transform_3(%arg0: i32) -> (i32, i32) {
    %c0_i32 = arith.constant 0 : i32
    %c0_i32_0 = arith.constant 0 : i32
    %c0_i32_1 = arith.constant 0 : i32
    return %c0_i32, %c0_i32_0 : i32, i32
  }
  func.func @transform_4(%arg0: i32) -> (i32, i32) {
    %c0_i32 = arith.constant 0 : i32
    %c0_i32_0 = arith.constant 0 : i32
    %c0_i32_1 = arith.constant 0 : i32
    return %c0_i32, %c0_i32_0 : i32, i32
  }
  func.func @transform_5(%arg0: i32) -> (i32, i32) {
    %c0_i32 = arith.constant 0 : i32
    %c0_i32_0 = arith.constant 0 : i32
    %c0_i32_1 = arith.constant 0 : i32
    return %c0_i32, %c0_i32_0 : i32, i32
  }
  func.func @transform_6(%arg0: i32) -> (i32, i32) {
    %c0_i32 = arith.constant 0 : i32
    %c0_i32_0 = arith.constant 0 : i32
    %c0_i32_1 = arith.constant 0 : i32
    return %c0_i32, %c0_i32_0 : i32, i32
  }
  func.func @transform_7(%arg0: i32) -> (i32, i32) {
    %c0_i32 = arith.constant 0 : i32
    %c0_i32_0 = arith.constant 0 : i32
    %c0_i32_1 = arith.constant 0 : i32
    return %c0_i32, %c0_i32_0 : i32, i32
  }
  func.func @transform_8(%arg0: i32) -> (i32, i32) {
    %c0_i32 = arith.constant 0 : i32
    %c0_i32_0 = arith.constant 0 : i32
    %c0_i32_1 = arith.constant 0 : i32
    return %c0_i32, %c0_i32_0 : i32, i32
  }
  func.func @transform_9(%arg0: i32) -> (i32, i32) {
    %c0_i32 = arith.constant 0 : i32
    %c0_i32_0 = arith.constant 0 : i32
    %c0_i32_1 = arith.constant 0 : i32
    return %c0_i32, %c0_i32_0 : i32, i32
  }
  func.func @transform_10(%arg0: i32) -> (i32, i32) {
    %c0_i32 = arith.constant 0 : i32
    %c0_i32_0 = arith.constant 0 : i32
    %c0_i32_1 = arith.constant 0 : i32
    return %c0_i32, %c0_i32_0 : i32, i32
  }
  func.func @transform_11(%arg0: i32) -> (i32, i32) {
    %c0_i32 = arith.constant 0 : i32
    %c0_i32_0 = arith.constant 0 : i32
    return %arg0, %c0_i32 : i32, i32
  }
}

</mosaic_0001>

<bundles_post_ra>
// kernel: tpu_custom_call.1
= control target key start
LH: loop header
LB: loop body
LE: loop exit
PB: predicated region body
PF: predicated region fallthrough
CT: control target
= control target key end

     0   :  { %16 = vsyncpa [#allocation3], 0  ;;  %s1584_s0 = inlined_call_operand.vmem [shape: f32[8,5], index: 0, kind: input, shape index: {}]   ;;  %s1585_s1 = inlined_call_operand.hbm [shape: f32[5,64], index: 1, kind: input, shape index: {}]   ;;  %s1586_s2 = inlined_call_operand.hbm [shape: f32[1,64], index: 2, kind: input, shape index: {}]   ;;  %s1587_s3 = inlined_call_operand.hbm [shape: bf16[64,128], index: 3, kind: input, shape index: {}]   ;;  %s1588_s4 = inlined_call_operand.hbm [shape: f32[1,128], index: 4, kind: input, shape index: {}]   ;;  %s1589_s5 = inlined_call_operand.vmem [shape: bf16[128,256], index: 5, kind: input, shape index: {}]   ;;  %s1590_s6 = inlined_call_operand.hbm [shape: f32[1,256], index: 6, kind: input, shape index: {}]   ;;  %s1591_s7 = inlined_call_operand.hbm [shape: bf16[256,256], index: 7, kind: input, shape index: {}]   ;;  %s1592_s8 = inlined_call_operand.hbm [shape: f32[1,256], index: 8, kind: input, shape index: {}]   ;;  %s1593_s9 = inlined_call_operand.vmem [shape: bf16[256,4], index: 9, kind: input, shape index: {}]   ;;  %s1594_s10 = inlined_call_operand.vmem [shape: f32[1,4], index: 10, kind: input, shape index: {}]   ;;  %s1595_s11 = inlined_call_operand.vmem [shape: f32[8,4], index: 11, kind: output, shape index: {}]  }
   0x1   :  { %17 = vsyncpa [#allocation5], 0 }
   0x2   :  { %18 = vsyncpa [#allocation8], 0  ;;  %s38_s19 = sshll.u32 %s1586_s2, 4  ;;  %s39_s19 = int_to_ptr.hbm [resolvable:$true] %s38_s19 }
   0x3   :  { %19 = vsyncpa [#allocation11], 0  ;;  %s1334_s20 = smov [#allocation4]   ;;  %s62_s24 = sshll.u32 %s1588_s4, 4  ;;  %s63_s24 = int_to_ptr.hbm [resolvable:$true] %s62_s24 }
   0x4   :  { %s40_s21 = sshll.u32 %s1334_s20, 4  ;;  %s1335_s25 = smov [#allocation7]   ;;  %s41_s21 = int_to_ptr.vmem [resolvable:$true] %s40_s21 }
   0x5   :  { %43 = dma.hbm_to_vmem [thread:$0]  %s39_s19, 16, %s41_s21, [#allocation5]  }
   0x6   :  { %s64_s26 = sshll.u32 %s1335_s25, 4  ;;  %s85_s29 = sshll.u32 %s1591_s7, 4  ;;  %s65_s26 = int_to_ptr.vmem [resolvable:$true] %s64_s26  ;;  %s86_s29 = int_to_ptr.hbm [resolvable:$true] %s85_s29 }
   0x7   :  { %67 = dma.hbm_to_vmem [thread:$0]  %s63_s24, 16, %s65_s26, [#allocation8]  }
   0x8   :  { %s1336_s2 = smov [#allocation10]   ;;  %s27_s14 = sshll.u32 %s1585_s1, 4  ;;  %s28_s14 = int_to_ptr.hbm [resolvable:$true] %s27_s14 }
   0x9   :  { %s87_s30 = sshll.u32 %s1336_s2, 4  ;;  %s1337_s15 = smov 128   ;;  %s88_s30 = int_to_ptr.vmem [resolvable:$true] %s87_s30 }
   0xa   :  { %s1338_s4 = smov 8   ;;  %s1339_s16 = smov [#allocation2]  }
   0xb   :  { %93 = dma.hbm_to_vmem [thread:$0]  %s86_s29, 4096, %s88_s30, [#allocation11], %s1337_s15, %s1337_s15, %s1338_s4  }
   0xc   :  { %s29_s17 = sshll.u32 %s1339_s16, 4  ;;  %s48_s7 = sshll.u32 %s1587_s3, 4  ;;  %s30_s17 = int_to_ptr.vmem [resolvable:$true] %s29_s17  ;;  %s49_s7 = int_to_ptr.hbm [resolvable:$true] %s48_s7 }
   0xd   :  { %32 = dma.hbm_to_vmem [thread:$0]  %s28_s14, 128, %s30_s17, [#allocation3]  }
   0xe   :  { %s1340_s20 = smov [#allocation6]   ;;  %s75_s1 = sshll.u32 %s1590_s6, 4  ;;  %s76_s1 = int_to_ptr.hbm [resolvable:$true] %s75_s1 }
   0xf   :  { %s50_s21 = sshll.u32 %s1340_s20, 4  ;;  %s1341_s24 = smov 64   ;;  %s51_s21 = int_to_ptr.vmem [resolvable:$true] %s50_s21 }
  0x10   :  { %s1342_s25 = smov 4   ;;  %s1343_s26 = smov [#allocation9]  }
  0x11   :  { %56 = dma.hbm_to_vmem [thread:$0]  %s49_s7, 512, %s51_s21, [#allocation5], %s1341_s24, %s1341_s24, %s1342_s25  }
  0x12   :  { %s77_s27 = sshll.u32 %s1343_s26, 4  ;;  %s99_s3 = sshll.u32 %s1592_s8, 4  ;;  %s78_s27 = int_to_ptr.vmem [resolvable:$true] %s77_s27  ;;  %s100_s3 = int_to_ptr.hbm [resolvable:$true] %s99_s3 }
  0x13   :  { %80 = dma.hbm_to_vmem [thread:$0]  %s76_s1, 32, %s78_s27, [#allocation8]  }
  0x14   :  { %s1344_s2 = smov [#allocation12]  }
  0x15   :  { %s101_s30 = sshll.u32 %s1344_s2, 4  ;;  %s102_s30 = int_to_ptr.vmem [resolvable:$true] %s101_s30 }
  0x16   :  { %104 = dma.hbm_to_vmem [thread:$0]  %s100_s3, 32, %s102_s30, [#allocation11]  }
  0x17   :  { %1326 = dma.done.wait [#allocation3], 128  }
  0x18   :  { %1327 = vsyncadd [#allocation3], 4294967168 }
  0x19   :  { %1328 = dma.done.wait [#allocation5], 528  }
  0x1a   :  { %1329 = vsyncadd [#allocation5], 4294966768 }
  0x1b   :  { %1330 = dma.done.wait [#allocation8], 48  }
  0x1c   :  { %1331 = vsyncadd [#allocation8], 4294967248 }
  0x1d   :  { %1332 = dma.done.wait [#allocation11], 4128  }
  0x1e   :  { %1333 = vsyncadd [#allocation11], 4294963168  ;;  %v1345_v0 = vmov 0   ;;  %v1346_v1 = vmov 2   ;;  %v1347_v2 = vmov 4   ;;  %v138_v3 = vld [vmem:[%s1584_s0] sm:$0xff] }
  0x1f   :  { %1149 = vset.pattern.permute.xlu0 %v1345_v0  ;;  %1151 = vset.pattern.permute.xlu1 %v1346_v1  ;;  %v1348_v4 = vmov 1   ;;  %v1349_v5 = vmov 3   ;;  %v1068_v6 = vld [vmem:[#allocation6 + $0x18] sm:$0xff]  ;;  %v1067_v7 = vld [vmem:[#allocation6 + $0x10] sm:$0xff]  ;;  %v1066_v8 = vld [vmem:[#allocation6 + $0x8] sm:$0xff]  ;;  %vm218_vm0 = vcmask 523264  }
  0x20   :  { %1153 = vset.pattern.permute.xlu2 %v1347_v2  ;;  %142 = vperm.xlu0 %1149, %v138_v3   ;;  %v1065_v9 = vld [vmem:[#allocation6] sm:$0xff]  ;;  %v1084_v11 = vld [vmem:[%s1589_s5 + $0x74] sm:$0xf0]  ;;  %v1083_v12 = vld [vmem:[%s1589_s5 + $0x74] sm:$0xf]  ;;  %vm782_vm1 = vcmask 31744  }
  0x21   :  { %155 = vperm.xlu1 %1151, %v138_v3   ;;  %169 = vperm.xlu2 %1153, %v138_v3   ;;  %v867_v10 = vld [vmem:[%s1589_s5 + $0x70] sm:$0xf]  ;;  %v869_v14 = vld [vmem:[%s1589_s5 + $0x78] sm:$0xf0]  ;;  %v859_v15 = vld [vmem:[%s1589_s5 + $0x60] sm:$0xf] }
  0x22   :  { %226 = vmatpush.bf16.msra.mxu0 %v1068_v6  ;;  %v868_v13 = vor.u32 %v1084_v11, %v867_v10  ;;  %v1082_v16 = vld [vmem:[%s1589_s5 + $0x64] sm:$0xf0]  ;;  %v872_v17 = vor.u32 %v1083_v12, %v869_v14  ;;  %v1081_v18 = vld [vmem:[%s1589_s5 + $0x64] sm:$0xf]  ;;  %v861_v19 = vld [vmem:[%s1589_s5 + $0x68] sm:$0xf0] }
  0x23   :  { %v860_v20 = vor.u32 %v1082_v16, %v859_v15  ;;  %v864_v21 = vor.u32 %v1081_v18, %v861_v19  ;;  %v851_v22 = vld [vmem:[%s1589_s5 + $0x50] sm:$0xf]  ;;  %v1080_v23 = vld [vmem:[%s1589_s5 + $0x54] sm:$0xf0]  ;;  %v1079_v24 = vld [vmem:[%s1589_s5 + $0x54] sm:$0xf] }
  0x24   :  { %339 = vmatpush.bf16.msra.mxu1 %v868_v13  ;;  %352 = vmatpush.bf16.msra.mxu2 %v872_v17  ;;  %v853_v25 = vld [vmem:[%s1589_s5 + $0x58] sm:$0xf0]  ;;  %v852_v28 = vor.u32 %v1080_v23, %v851_v22  ;;  %v843_v30 = vld [vmem:[%s1589_s5 + $0x40] sm:$0xf]  ;;  %v1078_v31 = vld [vmem:[%s1589_s5 + $0x44] sm:$0xf0] }
  0x25   :  { %v856_v29 = vor.u32 %v1079_v24, %v853_v25  ;;  %v139_v32 = vld [vmem:[#allocation2] sm:$0x1f]  ;;  %v845_v34 = vld [vmem:[%s1589_s5 + $0x48] sm:$0xf0]  ;;  %v844_v35 = vor.u32 %v1078_v31, %v843_v30  ;;  %v835_v39 = vld [vmem:[%s1589_s5 + $0x30] sm:$0xf] }
  0x26   :  { %227 = vmatpush.bf16.msra.mxu0 %v1067_v7  ;;  %v1077_v33 = vld [vmem:[%s1589_s5 + $0x44] sm:$0xf]  ;;  %v145_v36 = vperm.slane %v139_v32, 0  ;;  %v151_v37 = vperm.slane %v139_v32, 1  ;;  %v1076_v40 = vld [vmem:[%s1589_s5 + $0x34] sm:$0xf0] }
  0x27   :  { %v848_v38 = vor.u32 %v1077_v33, %v845_v34  ;;  %v1075_v41 = vld [vmem:[%s1589_s5 + $0x34] sm:$0xf]  ;;  %v837_v42 = vld [vmem:[%s1589_s5 + $0x38] sm:$0xf0]  ;;  %v158_v43 = vperm.slane %v139_v32, 2  ;;  %v165_v44 = vperm.slane %v139_v32, 3  ;;  %v836_v47 = vor.u32 %v1076_v40, %v835_v39 }
  0x28   :  { %1150 = vset.pattern.permute.xlu0 %v1348_v4  ;;  %340 = vmatpush.bf16.msra.mxu1 %v860_v20  ;;  %v172_v50 = vperm.slane %v139_v32, 4  ;;  %v840_v51 = vor.u32 %v1075_v41, %v837_v42  ;;  %v827_v52 = vld [vmem:[%s1589_s5 + $0x20] sm:$0xf]  ;;  %v1074_v53 = vld [vmem:[%s1589_s5 + $0x24] sm:$0xf0] }
  0x29   :  { %1152 = vset.pattern.permute.xlu1 %v1349_v5  ;;  %148 = vperm.xlu0 %1150, %v138_v3   ;;  %v1073_v55 = vld [vmem:[%s1589_s5 + $0x24] sm:$0xf]  ;;  %v829_v56 = vld [vmem:[%s1589_s5 + $0x28] sm:$0xf0]  ;;  %v828_v60 = vor.u32 %v1074_v53, %v827_v52  ;;  %v1155_v1 = vld [vmem:[#allocation4] ss:$0 sm:$0xff] }
  0x2a   :  { %162 = vperm.xlu1 %1152, %v138_v3   ;;  %228 = vmatpush.bf16.msra.mxu0 %v1066_v8  ;;  %v832_v63 = vor.u32 %v1073_v55, %v829_v56  ;;  %v819_v6 = vld [vmem:[%s1589_s5 + $0x10] sm:$0xf]  ;;  %v1072_v7 = vld [vmem:[%s1589_s5 + $0x14] sm:$0xf0]  ;;  %v1071_v8 = vld [vmem:[%s1589_s5 + $0x14] sm:$0xf] }
  0x2b   :  { %353 = vmatpush.bf16.msra.mxu2 %v864_v21  ;;  %v821_v10 = vld [vmem:[%s1589_s5 + $0x18] sm:$0xf0]  ;;  %v811_v12 = vld [vmem:[%s1589_s5] sm:$0xf]  ;;  %v1070_v13 = vld [vmem:[%s1589_s5 + $0x4] sm:$0xf0] }
  0x2c   :  { %341 = vmatpush.bf16.msra.mxu1 %v852_v28  ;;  %v824_v11 = vor.u32 %v1071_v8, %v821_v10  ;;  %v1069_v14 = vld [vmem:[%s1589_s5 + $0x4] sm:$0xf]  ;;  %v812_v15 = vor.u32 %v1070_v13, %v811_v12  ;;  %v813_v16 = vld [vmem:[%s1589_s5 + $0x8] sm:$0xf0]  ;;  %v931_v18 = vld [vmem:[#allocation10 + $0x70] sm:$0xf] }
  0x2d   :  { %v816_v17 = vor.u32 %v1069_v14, %v813_v16  ;;  %v1100_v19 = vld [vmem:[#allocation10 + $0x74] sm:$0xf0]  ;;  %v1099_v20 = vld [vmem:[#allocation10 + $0x74] sm:$0xf]  ;;  %v933_v22 = vld [vmem:[#allocation10 + $0x78] sm:$0xf0] }
  0x2e   :  { %229 = vmatpush.bf16.msra.mxu0 %v1065_v9  ;;  %v820_v9 = vor.u32 %v1072_v7, %v819_v6  ;;  %v932_v21 = vor.u32 %v1100_v19, %v931_v18  ;;  %v923_v23 = vld [vmem:[#allocation10 + $0x60] sm:$0xf]  ;;  %v1098_v24 = vld [vmem:[#allocation10 + $0x64] sm:$0xf0]  ;;  %v936_v25 = vor.u32 %v1099_v20, %v933_v22  ;;  %v995_v28 = vld [vmem:[#allocation10 + $0xf0] sm:$0xf] }
  0x2f   :  { %354 = vmatpush.bf16.msra.mxu2 %v856_v29  ;;  %v924_v29 = vor.u32 %v1098_v24, %v923_v23  ;;  %v1116_v30 = vld [vmem:[#allocation10 + $0xf4] sm:$0xf0]  ;;  %v1115_v31 = vld [vmem:[#allocation10 + $0xf4] sm:$0xf]  ;;  %v997_v32 = vld [vmem:[#allocation10 + $0xf8] sm:$0xf0] }
  0x30   :  { %342 = vmatpush.bf16.msra.mxu1 %v844_v35  ;;  %567 = vmatpush.bf16.msra.mxu3 %v932_v21  ;;  %v996_v34 = vor.u32 %v1116_v30, %v995_v28  ;;  %v1000_v35 = vor.u32 %v1115_v31, %v997_v32  ;;  %v917_v39 = vld [vmem:[#allocation10 + $0x58] sm:$0xf0]  ;;  %v987_v40 = vld [vmem:[#allocation10 + $0xe0] sm:$0xf]  ;;  %v1114_v41 = vld [vmem:[#allocation10 + $0xe4] sm:$0xf0] }
  0x31   :  { %1154 = vset.pattern.permute.xlu0 %v1347_v2  ;;  %v988_v42 = vor.u32 %v1114_v41, %v987_v40  ;;  %v1111_v52 = vld [vmem:[#allocation10 + $0xd4] sm:$0xf]  ;;  %v1093_v53 = vld [vmem:[#allocation10 + $0x44] sm:$0xf]  ;;  %v981_v55 = vld [vmem:[#allocation10 + $0xd8] sm:$0xf0] }
  0x32   :  { %580 = vmatpush.bf16.msrb.mxu0 %v996_v34  ;;  %v963_v6 = vld [vmem:[#allocation10 + $0xb0] sm:$0xf]  ;;  %v1108_v8 = vld [vmem:[#allocation10 + $0xb4] sm:$0xf0]  ;;  %v965_v10 = vld [vmem:[#allocation10 + $0xb8] sm:$0xf0] }
  0x33   :  { %355 = vmatpush.bf16.msra.mxu2 %v848_v38  ;;  %v1095_v38 = vld [vmem:[#allocation10 + $0x54] sm:$0xf]  ;;  %v891_v12 = vld [vmem:[#allocation10 + $0x20] sm:$0xf]  ;;  %v1090_v13 = vld [vmem:[#allocation10 + $0x24] sm:$0xf0]  ;;  %v964_v16 = vor.u32 %v1108_v8, %v963_v6 }
  0x34   :  { %343 = vmatpush.bf16.msra.mxu1 %v836_v47  ;;  %568 = vmatpush.bf16.msra.mxu3 %v924_v29  ;;  %v907_v47 = vld [vmem:[#allocation10 + $0x40] sm:$0xf]  ;;  %v1089_v14 = vld [vmem:[#allocation10 + $0x24] sm:$0xf]  ;;  %v892_v18 = vor.u32 %v1090_v13, %v891_v12  ;;  %v1156_v20 = vld [vmem:[#allocation7] ss:$0 sm:$0xff] }
  0x35   :  { %v1087_v28 = vld [vmem:[#allocation10 + $0x14] sm:$0xf]  ;;  %v885_v30 = vld [vmem:[#allocation10 + $0x18] sm:$0xf0]  ;;  %v955_v32 = vld [vmem:[#allocation10 + $0xa0] sm:$0xf] }
  0x36   :  { %581 = vmatpush.bf16.msrb.mxu0 %v988_v42  ;;  %v888_v31 = vor.u32 %v1087_v28, %v885_v30  ;;  %v1105_v34 = vld [vmem:[#allocation10 + $0xa4] sm:$0xf]  ;;  %v877_v42 = vld [vmem:[#allocation10 + $0x8] sm:$0xf0]  ;;  %v1129_v13 = vld [vmem:[%s1593_s9 + $0x60] sm:$0xff] }
  0x37   :  { %356 = vmatpush.bf16.msra.mxu2 %v840_v51  ;;  %v1112_v51 = vld [vmem:[#allocation10 + $0xd4] sm:$0xf0]  ;;  %v1085_v40 = vld [vmem:[#allocation10 + $0x4] sm:$0xf]  ;;  %v1120_v12 = vld [vmem:[%s1593_s9 + $0x18] sm:$0xff] }
  0x38   :  { %344 = vmatpush.bf16.msra.mxu1 %v828_v60  ;;  %v1110_v60 = vld [vmem:[#allocation10 + $0xc4] sm:$0xf0] }
  0x3b   :  { %357 = vmatpush.bf16.msra.mxu2 %v832_v63 }
  0x3c   :  { %345 = vmatpush.bf16.msra.mxu1 %v820_v9  ;;  %v1107_v9 = vld [vmem:[#allocation10 + $0xb4] sm:$0xf] }
  0x3f   :  { %358 = vmatpush.bf16.msra.mxu2 %v824_v11 }
  0x40   :  { %346 = vmatpush.bf16.msra.mxu1 %v812_v15  ;;  %v893_v15 = vld [vmem:[#allocation10 + $0x28] sm:$0xf0] }
  0x41   :  { %v896_v19 = vor.u32 %v1089_v14, %v893_v15  ;;  %v1119_v14 = vld [vmem:[%s1593_s9 + $0x10] sm:$0xff]  ;;  %v1128_v15 = vld [vmem:[%s1593_s9 + $0x58] sm:$0xff] }
  0x43   :  { %359 = vmatpush.bf16.msra.mxu2 %v816_v17  ;;  %v968_v17 = vor.u32 %v1107_v9, %v965_v10 }
  0x44   :  { %593 = vmatpush.bf16.msrb.mxu1 %v936_v25 }
  0x47   :  { %606 = vmatpush.bf16.msrb.mxu2 %v1000_v35 }
  0x7b   :  { %v170_v54 = vpop.permute.xlu2 %169 }
  0x7c   :  { %v173_v62 = vmul.f32 %v172_v50, %v170_v54  ;;  %v979_v50 = vld [vmem:[#allocation10 + $0xd0] sm:$0xf]  ;;  %v909_v54 = vld [vmem:[#allocation10 + $0x48] sm:$0xf0] }
  0x7d   :  { %v980_v56 = vor.u32 %v1112_v51, %v979_v50  ;;  %v912_v63 = vor.u32 %v1093_v53, %v909_v54  ;;  %v939_v50 = vld [vmem:[#allocation10 + $0x80] sm:$0xf]  ;;  %v1102_v51 = vld [vmem:[#allocation10 + $0x84] sm:$0xf0]  ;;  %v941_v54 = vld [vmem:[#allocation10 + $0x88] sm:$0xf0] }
  0x7e   :  { %v940_v53 = vor.u32 %v1102_v51, %v939_v50 }
  0x7f   :  { %582 = vmatpush.bf16.msrb.mxu0 %v980_v56  ;;  %v1124_v56 = vld [vmem:[%s1593_s9 + $0x38] sm:$0xff] }
  0x92   :  { %v143_v26 = vpop.permute.xlu0 %142 }
  0x93   :  { %v156_v27 = vpop.permute.xlu1 %155  ;;  %v146_v48 = vmul.f32 %v145_v36, %v143_v26  ;;  %v1097_v26 = vld [vmem:[#allocation10 + $0x64] sm:$0xf]  ;;  %v915_v36 = vld [vmem:[#allocation10 + $0x50] sm:$0xf] }
  0x94   :  { %v159_v57 = vmul.f32 %v158_v43, %v156_v27  ;;  %v925_v27 = vld [vmem:[#allocation10 + $0x68] sm:$0xf0]  ;;  %v1113_v43 = vld [vmem:[#allocation10 + $0xe4] sm:$0xf] }
  0x95   :  { %v928_v33 = vor.u32 %v1097_v26, %v925_v27  ;;  %v883_v26 = vld [vmem:[#allocation10 + $0x10] sm:$0xf]  ;;  %v1088_v27 = vld [vmem:[#allocation10 + $0x14] sm:$0xf0] }
  0x96   :  { %v884_v29 = vor.u32 %v1088_v27, %v883_v26 }
  0x97   :  { %594 = vmatpush.bf16.msrb.mxu1 %v928_v33  ;;  %v1106_v33 = vld [vmem:[#allocation10 + $0xa4] sm:$0xf0] }
  0x98   :  { %v956_v35 = vor.u32 %v1106_v33, %v955_v32 }
  0x9b   :  { %v149_v45 = vpop.permute.xlu0 %148 }
  0x9c   :  { %v163_v46 = vpop.permute.xlu1 %162  ;;  %v152_v49 = vmul.f32 %v151_v37, %v149_v45  ;;  %v1096_v37 = vld [vmem:[#allocation10 + $0x54] sm:$0xf0] }
  0x9d   :  { %v166_v59 = vmul.f32 %v165_v44, %v163_v46  ;;  %v989_v44 = vld [vmem:[#allocation10 + $0xe8] sm:$0xf0]  ;;  %v916_v45 = vor.u32 %v1096_v37, %v915_v36 }
  0x9e   :  { %v153_v58 = vadd.f32 %v152_v49, %v146_v48  ;;  %v992_v46 = vor.u32 %v1113_v43, %v989_v44  ;;  %v1094_v48 = vld [vmem:[#allocation10 + $0x44] sm:$0xf0]  ;;  %v920_v49 = vor.u32 %v1095_v38, %v917_v39  ;;  %v957_v36 = vld [vmem:[#allocation10 + $0xa8] sm:$0xf0]  ;;  %v875_v38 = vld [vmem:[#allocation10] sm:$0xf]  ;;  %v880_v43 = vor.u32 %v1085_v40, %v877_v42 }
  0x9f   :  { %569 = vmatpush.bf16.msra.mxu3 %v916_v45  ;;  %v960_v37 = vor.u32 %v1105_v34, %v957_v36  ;;  %v1086_v39 = vld [vmem:[#allocation10 + $0x4] sm:$0xf0]  ;;  %v947_v44 = vld [vmem:[#allocation10 + $0x90] sm:$0xf]  ;;  %v1104_v45 = vld [vmem:[#allocation10 + $0x94] sm:$0xf0] }
  0xa0   :  { %v160_v61 = vadd.f32 %v159_v57, %v153_v58  ;;  %607 = vmatpush.bf16.msrb.mxu2 %v992_v46  ;;  %v984_v57 = vor.u32 %v1111_v52, %v981_v55  ;;  %v971_v58 = vld [vmem:[#allocation10 + $0xc0] sm:$0xf]  ;;  %595 = vmatpush.bf16.msrb.mxu1 %v920_v49  ;;  %v876_v41 = vor.u32 %v1086_v39, %v875_v38  ;;  %v1101_v52 = vld [vmem:[#allocation10 + $0x84] sm:$0xf]  ;;  %v1157_v40 = vld [vmem:[%s1594_s10] ss:$0 sm:$0xff] }
  0xa1   :  { %v948_v46 = vor.u32 %v1104_v45, %v947_v44  ;;  %v944_v55 = vor.u32 %v1101_v52, %v941_v54 }
  0xa2   :  { %v167_v0 = vadd.f32 %v166_v59, %v160_v61  ;;  %v908_v59 = vor.u32 %v1094_v48, %v907_v47  ;;  %v1109_v61 = vld [vmem:[#allocation10 + $0xc4] sm:$0xf]  ;;  %v1103_v47 = vld [vmem:[#allocation10 + $0x94] sm:$0xf]  ;;  %v949_v48 = vld [vmem:[#allocation10 + $0x98] sm:$0xf0] }
  0xa3   :  { %v952_v49 = vor.u32 %v1103_v47, %v949_v48 }
  0xa4   :  { %v174_v2 = vadd.f32 %v173_v62, %v167_v0  ;;  %v973_v62 = vld [vmem:[#allocation10 + $0xc8] sm:$0xf0]  ;;  %v899_v0 = vld [vmem:[#allocation10 + $0x30] sm:$0xf]  ;;  %608 = vmatpush.bf16.msrb.mxu2 %v984_v57  ;;  %570 = vmatpush.bf16.msra.mxu3 %v908_v59  ;;  %v1131_v59 = vld [vmem:[%s1593_s9 + $0x70] sm:$0xff] }
  0xa5   :  { %596 = vmatpush.bf16.msrb.mxu1 %v912_v63  ;;  %v1132_v57 = vld [vmem:[%s1593_s9 + $0x78] sm:$0xff]  ;;  %v253_v63 = vld [vmem:[#allocation9] sm:$0x3] }
  0xa6   :  { %v179_v3 = vadd.f32 %v1155_v1, %v174_v2  ;;  %v1092_v1 = vld [vmem:[#allocation10 + $0x34] sm:$0xf0]  ;;  %v1091_v2 = vld [vmem:[#allocation10 + $0x34] sm:$0xf] }
  0xa7   :  { %v900_v7 = vor.u32 %v1092_v1, %v899_v0  ;;  %v255_v0 = vperm.slane %v253_v63, 0 }
  0xa8   :  { %v180_v4 = vmax.f32 %v179_v3, 0.0  ;;  %v901_v3 = vld [vmem:[#allocation10 + $0x38] sm:$0xf0] }
  0xa9   :  { %v904_v11 = vor.u32 %v1091_v2, %v901_v3  ;;  %571 = vmatpush.bf16.msra.mxu3 %v900_v7 }
  0xaa   :  { %v181_v5 = vpack.c.bf16 %v180_v4, %v180_v4  ;;  %v972_v4 = vor.u32 %v1110_v60, %v971_v58  ;;  %v1123_v58 = vld [vmem:[%s1593_s9 + $0x30] sm:$0xff]  ;;  %v1122_v60 = vld [vmem:[%s1593_s9 + $0x28] sm:$0xff] }
  0xab   :  { %597 = vmatpush.bf16.msrb.mxu1 %v904_v11 }
  0xac   :  { %808 = vmatmul.msk.bf16.vlgmr.msra.gmra.mxu0 %vm218_vm0, %v181_v5  ;;  %v976_v5 = vor.u32 %v1109_v61, %v973_v62  ;;  %v1130_v61 = vld [vmem:[%s1593_s9 + $0x68] sm:$0xff]  ;;  %v1121_v62 = vld [vmem:[%s1593_s9 + $0x20] sm:$0xff] }
  0xad   :  { %583 = vmatpush.bf16.msrb.mxu0 %v972_v4  ;;  %572 = vmatpush.bf16.msra.mxu3 %v892_v18  ;;  %v256_v4 = vperm.slane %v253_v63, 1  ;;  %v1117_v18 = vld [vmem:[%s1593_s9] sm:$0xff] }
  0xae   :  { %609 = vmatpush.bf16.msrb.mxu2 %v976_v5 }
  0xaf   :  { %598 = vmatpush.bf16.msrb.mxu1 %v896_v19  ;;  %v1126_v19 = vld [vmem:[%s1593_s9 + $0x48] sm:$0xff] }
  0xb1   :  { %584 = vmatpush.bf16.msrb.mxu0 %v964_v16  ;;  %573 = vmatpush.bf16.msra.mxu3 %v884_v29  ;;  %v1118_v16 = vld [vmem:[%s1593_s9 + $0x8] sm:$0xff] }
  0xb2   :  { %610 = vmatpush.bf16.msrb.mxu2 %v968_v17  ;;  %v1127_v17 = vld [vmem:[%s1593_s9 + $0x50] sm:$0xff] }
  0xb3   :  { %599 = vmatpush.bf16.msrb.mxu1 %v888_v31 }
  0xb5   :  { %585 = vmatpush.bf16.msrb.mxu0 %v956_v35  ;;  %574 = vmatpush.bf16.msra.mxu3 %v876_v41 }
  0xb6   :  { %611 = vmatpush.bf16.msrb.mxu2 %v960_v37 }
  0xb7   :  { %600 = vmatpush.bf16.msrb.mxu1 %v880_v43 }
  0xb9   :  { %586 = vmatpush.bf16.msrb.mxu0 %v948_v46  ;;  %755 = vmatpush.bf16.msrb.mxu3 %v1124_v56 }
  0xba   :  { %612 = vmatpush.bf16.msrb.mxu2 %v952_v49 }
  0xbd   :  { %587 = vmatpush.bf16.msrb.mxu0 %v940_v53  ;;  %756 = vmatpush.bf16.msrb.mxu3 %v1123_v58 }
  0xbe   :  { %613 = vmatpush.bf16.msrb.mxu2 %v944_v55 }
  0xc1   :  { %768 = vmatpush.bf16.msra.mxu0 %v1132_v57  ;;  %757 = vmatpush.bf16.msrb.mxu3 %v1122_v60 }
  0xc5   :  { %769 = vmatpush.bf16.msra.mxu0 %v1131_v59  ;;  %758 = vmatpush.bf16.msrb.mxu3 %v1121_v62 }
  0xc9   :  { %770 = vmatpush.bf16.msra.mxu0 %v1130_v61  ;;  %759 = vmatpush.bf16.msrb.mxu3 %v1120_v12 }
  0xcd   :  { %771 = vmatpush.bf16.msra.mxu0 %v1129_v13  ;;  %760 = vmatpush.bf16.msrb.mxu3 %v1119_v14 }
  0xd1   :  { %772 = vmatpush.bf16.msra.mxu0 %v1128_v15  ;;  %761 = vmatpush.bf16.msrb.mxu3 %v1118_v16 }
  0xd5   :  { %773 = vmatpush.bf16.msra.mxu0 %v1127_v17  ;;  %762 = vmatpush.bf16.msrb.mxu3 %v1117_v18 }
  0xd9   :  { %774 = vmatpush.bf16.msra.mxu0 %v1126_v19 }
 0x129   :  { %v231_v21 = vpop.f32.mrf.mxu0 }
 0x12a   :  { %v232_v22 = vadd.f32 %v1156_v20, %v231_v21  ;;  %v1125_v20 = vld [vmem:[%s1593_s9 + $0x40] sm:$0xff] }
 0x12b   :  { %775 = vmatpush.bf16.msra.mxu0 %v1125_v20 }
 0x12c   :  { %v235_v23 = vmax.f32 %v232_v22, 0.0  ;;  %v401_v22 = vld [vmem:[#allocation12] sm:$0x3] }
 0x12d   :  { %v404_v26 = vperm.slane %v401_v22, 1 }
 0x12e   :  { %v236_v24 = vpack.c.bf16 %v235_v23, %v235_v23  ;;  %v403_v23 = vperm.slane %v401_v22, 0 }
 0x130   :  { %347 = vmatmul.bf16.vlgmr.msra.gmra.mxu1 %v236_v24  ;;  %360 = vmatmul.bf16.vlgmr.msra.gmra.mxu2 %v236_v24 }
 0x131   :  { %v233_v25 = vpop.f32.mrf.mxu0 }
 0x1ad   :  { %v348_v1 = vpop.f32.mrf.mxu1 }
 0x1ae   :  { %v349_v2 = vadd.f32 %v348_v1, %v255_v0 }
 0x1b0   :  { %v365_v3 = vmax.f32 %v349_v2, 0.0 }
 0x1b2   :  { %v367_v5 = vpack.c.bf16 %v365_v3, %v365_v3 }
 0x1b3   :  { %v361_v6 = vpop.f32.mrf.mxu2 }
 0x1b4   :  { %v362_v7 = vadd.f32 %v361_v6, %v256_v4  ;;  %575 = vmatmul.bf16.vlgmr.msra.gmra.mxu3 %v367_v5  ;;  %601 = vmatmul.bf16.vlgmr.msrb.gmra.mxu1 %v367_v5 }
 0x1b5   :  { %v350_v8 = vpop.f32.mrf.mxu1 }
 0x1b6   :  { %v366_v9 = vmax.f32 %v362_v7, 0.0 }
 0x1b8   :  { %v368_v10 = vpack.c.bf16 %v366_v9, %v366_v9 }
 0x1ba   :  { %588 = vmatmul.bf16.vlgmr.msrb.gmra.mxu0 %v368_v10  ;;  %614 = vmatmul.bf16.vlgmr.msrb.gmra.mxu2 %v368_v10 }
 0x1bb   :  { %v363_v11 = vpop.f32.mrf.mxu2 }
 0x231   :  { %v602_v21 = vpop.f32.mrf.mxu1 }
 0x232   :  { %v603_v30 = vadd.f32 %v602_v21, %v404_v26 }
 0x237   :  { %v576_v24 = vpop.f32.mrf.mxu3  ;;  %v589_v25 = vpop.f32.mrf.mxu0 }
 0x238   :  { %v577_v27 = vadd.f32 %v576_v24, %v403_v23 }
 0x239   :  { %v604_v28 = vpop.f32.mrf.mxu1 }
 0x23a   :  { %v590_v29 = vadd.f32 %v589_v25, %v577_v27 }
 0x23c   :  { %v619_v31 = vmax.f32 %v590_v29, 0.0 }
 0x23d   :  { %v615_v32 = vpop.f32.mrf.mxu2 }
 0x23e   :  { %v621_v33 = vpack.c.bf16 %v619_v31, %v619_v31  ;;  %v616_v34 = vadd.f32 %v615_v32, %v603_v30 }
 0x23f   :  { %v578_v35 = vpop.f32.mrf.mxu3  ;;  %v591_v36 = vpop.f32.mrf.mxu0 }
 0x240   :  { %v620_v37 = vmax.f32 %v616_v34, 0.0  ;;  %763 = vmatmul.bf16.vlgmr.msrb.gmra.mxu3 %v621_v33 }
 0x242   :  { %v622_v38 = vpack.c.bf16 %v620_v37, %v620_v37 }
 0x244   :  { %776 = vmatmul.bf16.vlgmr.msra.gmra.mxu0 %v622_v38 }
 0x245   :  { %v617_v39 = vpop.f32.mrf.mxu2 }
 0x2c1   :  { %v777_v41 = vpop.f32.mrf.mxu0 }
 0x2c3   :  { %v764_v42 = vpop.f32.mrf.mxu3 }
 0x2c4   :  { %v765_v43 = vadd.f32 %v1157_v40, %v764_v42 }
 0x2c6   :  { %v778_v44 = vadd.f32 %v777_v41, %v765_v43 }
 0x2c8   :  { %v781_v45 = vmax.f32 %v778_v44, 0.0 }
 0x2c9   :  { %v779_v46 = vpop.f32.mrf.mxu0 }
 0x2ca   :  { %783 = vst.msk [vmem:[%s1595_s11] sm:$0xff] %vm782_vm1, %v781_v45 }
 0x2cb   :  { %v766_v47 = vpop.f32.mrf.mxu3 }
 0x2cc   :  { %788 = vsyncpa [#allocation3], 1 }
 0x2cd   :  { %789 = vsyncpa [#allocation5], 1 }
 0x2ce   :  { %790 = vsyncpa [#allocation8], 1 }
 0x2cf   :  { %791 = vsyncpa [#allocation11], 1 }

</bundles_post_ra>
